<compile_context>
chip_gen: v6e
topology: v6e:2x2x1
jax: 0.10.0
libtpu: 0.0.40
codegen_flags: <defaults>
</compile_context>

<pallas_src>
import functools

import jax
import jax.numpy as jnp
import numpy as np
from jax import lax
from jax.experimental import pallas as pl
from jax.experimental.pallas import tpu as pltpu

_EPS = 1e-8  # F.cosine_similarity default eps
# TODO(synk): PyTorch clamps each norm separately (x/max(||x||,eps) . y/max(||y||,eps));
# here max(||x||*||y||, eps) is clamped — identical unless a feature row is ~zero.


def _feature_loss_kernel(batch, lab_ref, tf_ref, ff_ref, out_ref):
    # ---- per-class cosine distance, fully vectorized -------------------------
    x = tf_ref[...].astype(jnp.float32)                       # (C, D)
    y = ff_ref[...].astype(jnp.float32)                       # (C, D)
    dot = jnp.sum(x * y, axis=-1, keepdims=True)              # (C, 1)
    sxx = jnp.sum(x * x, axis=-1, keepdims=True)              # (C, 1)
    syy = jnp.sum(y * y, axis=-1, keepdims=True)              # (C, 1)
    cos = dot * lax.rsqrt(jnp.maximum(sxx * syy, jnp.float32(_EPS * _EPS)))
    dist = 1.0 - cos                                          # (C, 1)

    # ---- per-class label histogram (padding value -1 matches no class) -------
    C = tf_ref.shape[0]
    lab = lab_ref[...]                                        # (1, BP) int32
    class_ids = lax.broadcasted_iota(jnp.int32, (C, lab.shape[1]), 0)
    counts = jnp.sum((class_ids == lab).astype(jnp.float32),
                     axis=-1, keepdims=True)                  # (C, 1)

    # ---- reduce: labels all equal  <=>  one class holds all B labels ---------
    max_count = jnp.max(counts, axis=0, keepdims=True)        # (1, 1)
    loss_sum = jnp.sum(counts * dist, axis=0, keepdims=True)  # (1, 1)
    inv_b = jnp.float32(1.0 / batch) if batch > 0 else jnp.float32(0.0)
    out_ref[...] = jnp.where(max_count < jnp.float32(batch),
                             loss_sum * inv_b,
                             jnp.zeros_like(loss_sum))


def feature_loss(text_features, fix_label_features, label):
    """Pallas implementation of FeatureLoss.forward."""
    B = int(label.shape[0])
    C, D = text_features.shape

    # Lane-pad labels to a multiple of 128 (pad value -1 hits no class id).
    BP = max(128, ((B + 127) // 128) * 128)
    lab_pad = jnp.full((1, BP), -1, dtype=jnp.int32)
    lab_pad = lab_pad.at[0, :B].set(label.astype(jnp.int32))

    out = pl.pallas_call(
        functools.partial(_feature_loss_kernel, B),
        out_shape=jax.ShapeDtypeStruct((1, 1), jnp.float32),
        in_specs=[
            pl.BlockSpec(memory_space=pltpu.MemorySpace.VMEM),   # labels (1, BP)
            pl.BlockSpec(memory_space=pltpu.MemorySpace.VMEM),   # text_features (C, D)
            pl.BlockSpec(memory_space=pltpu.MemorySpace.VMEM),   # fix_label_features (C, D)
        ],
        out_specs=pl.BlockSpec(memory_space=pltpu.MemorySpace.VMEM),
    )(lab_pad, text_features, fix_label_features)
    return out[0, 0]


def _reference(text_features, fix_label_features, label):
    """Plain numpy re-implementation of the PyTorch forward (for checking)."""
    tf = np.asarray(text_features, dtype=np.float32)
    ff = np.asarray(fix_label_features, dtype=np.float32)
    lab = np.asarray(label)
    loss, n = 0.0, 0
    for i in range(lab.shape[0]):
        if np.sum(lab != lab[i]) > 0:
            idx = int(lab[i])
            x, y = tf[idx], ff[idx]
            cos = float(x @ y) / max(float(np.linalg.norm(x) * np.linalg.norm(y)), _EPS)
            loss += 1.0 - cos
            n += 1
    return loss / n if n else loss


if __name__ == "__main__":
    key = jax.random.PRNGKey(0)
    k1, k2, k3 = jax.random.split(key, 3)

    num_classes, feat_dim, batch = 16, 128, 8
    text_features = jax.random.normal(k1, (num_classes, feat_dim), jnp.float32)
    fix_label_features = jax.random.normal(k2, (num_classes, feat_dim), jnp.float32)
    label = jax.random.randint(k3, (batch,), 0, num_classes, dtype=jnp.int32)

    loss = jax.block_until_ready(feature_loss(text_features, fix_label_features, label))
    ref = _reference(text_features, fix_label_features, label)
    assert abs(float(loss) - ref) < 1e-4, (float(loss), ref)

    # degenerate branch: all labels equal -> loss must be exactly 0
    loss_eq = jax.block_until_ready(
        feature_loss(text_features, fix_label_features,
                     jnp.full((batch,), 3, dtype=jnp.int32)))
    assert abs(float(loss_eq)) < 1e-6, float(loss_eq)

    print("KERNEL_OK")
</pallas_src>

<mosaic_0001>
module attributes {stable_mosaic.version = 11 : i64} {
  func.func @_feature_loss_kernel(%arg0: memref<1x128xi32, #tpu.memory_space<vmem>>, %arg1: memref<16x128xf32, #tpu.memory_space<vmem>>, %arg2: memref<16x128xf32, #tpu.memory_space<vmem>>, %arg3: memref<1x1xf32, #tpu.memory_space<vmem>>) attributes {dimension_semantics = [], scalar_prefetch = 0 : i64, scratch_operands = 0 : i64, tpu.core_type = #tpu.core_type<tc>} {
    %c0 = arith.constant 0 : index
    %c0_0 = arith.constant 0 : index
    %0 = vector.load %arg1[%c0, %c0_0] : memref<16x128xf32, #tpu.memory_space<vmem>>, vector<16x128xf32>
    %c0_1 = arith.constant 0 : index
    %c0_2 = arith.constant 0 : index
    %1 = vector.load %arg2[%c0_1, %c0_2] : memref<16x128xf32, #tpu.memory_space<vmem>>, vector<16x128xf32>
    %2 = arith.mulf %0, %1 : vector<16x128xf32>
    %cst = arith.constant dense<0.000000e+00> : vector<16xf32>
    %3 = vector.multi_reduction <add>, %2, %cst [1] : vector<16x128xf32> to vector<16xf32>
    %4 = vector.shape_cast %3 : vector<16xf32> to vector<16x1xf32>
    %5 = arith.mulf %0, %0 : vector<16x128xf32>
    %cst_3 = arith.constant dense<0.000000e+00> : vector<16xf32>
    %6 = vector.multi_reduction <add>, %5, %cst_3 [1] : vector<16x128xf32> to vector<16xf32>
    %7 = vector.shape_cast %6 : vector<16xf32> to vector<16x1xf32>
    %8 = arith.mulf %1, %1 : vector<16x128xf32>
    %cst_4 = arith.constant dense<0.000000e+00> : vector<16xf32>
    %9 = vector.multi_reduction <add>, %8, %cst_4 [1] : vector<16x128xf32> to vector<16xf32>
    %10 = vector.shape_cast %9 : vector<16xf32> to vector<16x1xf32>
    %11 = arith.mulf %7, %10 : vector<16x1xf32>
    %cst_5 = arith.constant 1.000000e-16 : f32
    %12 = vector.broadcast %cst_5 : f32 to vector<16x1xf32>
    %13 = arith.maximumf %11, %12 : vector<16x1xf32>
    %14 = math.rsqrt %13 : vector<16x1xf32>
    %15 = arith.mulf %4, %14 : vector<16x1xf32>
    %cst_6 = arith.constant 1.000000e+00 : f32
    %16 = vector.broadcast %cst_6 : f32 to vector<16x1xf32>
    %17 = arith.subf %16, %15 : vector<16x1xf32>
    %c0_7 = arith.constant 0 : index
    %c0_8 = arith.constant 0 : index
    %18 = vector.load %arg0[%c0_7, %c0_8] : memref<1x128xi32, #tpu.memory_space<vmem>>, vector<1x128xi32>
    %19 = tpu.iota {dimensions = array<i32: 0>} : vector<16x128xi32>
    %20 = vector.broadcast %18 : vector<1x128xi32> to vector<16x128xi32>
    %21 = arith.cmpi eq, %19, %20 : vector<16x128xi32>
    %22 = arith.extui %21 : vector<16x128xi1> to vector<16x128xi32>
    %23 = arith.sitofp %22 : vector<16x128xi32> to vector<16x128xf32>
    %cst_9 = arith.constant dense<0.000000e+00> : vector<16xf32>
    %24 = vector.multi_reduction <add>, %23, %cst_9 [1] : vector<16x128xf32> to vector<16xf32>
    %25 = vector.shape_cast %24 : vector<16xf32> to vector<16x1xf32>
    %cst_10 = arith.constant dense<0xFF800000> : vector<1xf32>
    %26 = vector.multi_reduction <maximumf>, %25, %cst_10 [0] : vector<16x1xf32> to vector<1xf32>
    %27 = vector.shape_cast %26 : vector<1xf32> to vector<1x1xf32>
    %28 = arith.mulf %25, %17 : vector<16x1xf32>
    %cst_11 = arith.constant dense<0.000000e+00> : vector<1xf32>
    %29 = vector.multi_reduction <add>, %28, %cst_11 [0] : vector<16x1xf32> to vector<1xf32>
    %30 = vector.shape_cast %29 : vector<1xf32> to vector<1x1xf32>
    %cst_12 = arith.constant 8.000000e+00 : f32
    %31 = vector.broadcast %cst_12 : f32 to vector<1x1xf32>
    %32 = arith.cmpf olt, %27, %31 : vector<1x1xf32>
    %cst_13 = arith.constant 1.250000e-01 : f32
    %33 = vector.broadcast %cst_13 : f32 to vector<1x1xf32>
    %34 = arith.mulf %30, %33 : vector<1x1xf32>
    %cst_14 = arith.constant 0.000000e+00 : f32
    %35 = vector.broadcast %cst_14 : f32 to vector<1x1xf32>
    %36 = arith.select %32, %34, %35 : vector<1x1xi1>, vector<1x1xf32>
    %c0_15 = arith.constant 0 : index
    %c0_16 = arith.constant 0 : index
    %37 = vector.load %arg3[%c0_15, %c0_16] : memref<1x1xf32, #tpu.memory_space<vmem>>, vector<1x1xf32>
    tpu.vector_store %arg3[%c0_15, %c0_16], %36 {strides = array<i32>} : memref<1x1xf32, #tpu.memory_space<vmem>>, vector<1x1xf32>,
    return
  }
}

</mosaic_0001>

<bundles_post_ra>
// kernel: tpu_custom_call.1
= control target key start
LH: loop header
LB: loop body
LE: loop exit
PB: predicated region body
PF: predicated region fallthrough
CT: control target
= control target key end

     0   :  { %8 = vsyncpa [#allocation3], 0  ;;  %s280_s0 = inlined_call_operand.hbm [shape: s32[1,128], index: 0, kind: input, shape index: {}]   ;;  %s281_s1 = inlined_call_operand.hbm [shape: f32[16,128], index: 1, kind: input, shape index: {}]   ;;  %s282_s2 = inlined_call_operand.hbm [shape: f32[16,128], index: 2, kind: input, shape index: {}]   ;;  %s283_s3 = inlined_call_operand.hbm [shape: f32[1,1], index: 3, kind: output, shape index: {}]  }
   0x1   :  { %9 = vsyncpa [#allocation6], 0 }
   0x2   :  { %10 = vsyncpa [#allocation4], 0  ;;  %s241_s12 = smov [#allocation5]  }
   0x3   :  { %s26_s13 = sshll.u32 %s241_s12, 4  ;;  %s27_s13 = int_to_ptr.vmem [resolvable:$true] %s26_s13 }
   0x4   :  { %s163_s14 = scalar_lea.vmem %s27_s13, 256  ;;  %p168_p1 = scmp.lt.s32.totalorder %s27_s13, %s27_s13 }
   0x5   :  { %p164_p0 = scmp.ne.s32.totalorder %s27_s13, %s163_s14  ;;  %p169_p2 = scmp.lt.s32.totalorder %s163_s14, %s163_s14 }
   0x7   :  { %p170_p3 = por %p169_p2, %p168_p1 }
   0x9   :  { %p171_p4 = pnand %p170_p3, %p164_p0 }
   0xb   :  { %174 = shalt.err (!%p171_p4)
}
   0xc   :  { %s242_s15 = smov 128   ;;  %s243_s16 = smov 8  }
   0xd   :  { %32 = dma.hbm_to_vmem [thread:$0]  %s281_s1, 256, %s27_s13, [#allocation6], %s242_s15, %s242_s15, %s243_s16  }
   0xe   :  { %s244_s19 = smov [#allocation2]   ;;  %s245_s21 = smov [#allocation7]  }
   0xf   :  { %s17_s20 = sshll.u32 %s244_s19, 4  ;;  %s38_s22 = sshll.u32 %s245_s21, 4  ;;  %s18_s20 = int_to_ptr.vmem [resolvable:$true] %s17_s20  ;;  %s39_s22 = int_to_ptr.vmem [resolvable:$true] %s38_s22 }
  0x10   :  { %s183_s23 = scalar_lea.vmem %s18_s20, 16  ;;  %s187_s24 = scalar_lea.vmem %s18_s20, 32 }
  0x11   :  { %p184_p5 = scmp.ne.s32.totalorder %s18_s20, %s183_s23  ;;  %p188_p6 = scmp.lt.s32.totalorder %s18_s20, %s18_s20 }
  0x12   :  { %p189_p7 = scmp.lt.s32.totalorder %s187_s24, %s183_s23 }
  0x14   :  { %p190_p8 = por %p189_p7, %p188_p6 }
  0x16   :  { %p191_p9 = pnand %p190_p8, %p184_p5 }
  0x18   :  { %194 = shalt.err (!%p191_p9)
}
  0x19   :  { %20 = dma.hbm_to_vmem [thread:$0]  %s280_s0, 16, %s18_s20, [#allocation3]  }
  0x1a   :  { %s203_s27 = scalar_lea.vmem %s39_s22, 256  ;;  %p208_p11 = scmp.lt.s32.totalorder %s39_s22, %s39_s22 }
  0x1b   :  { %p204_p10 = scmp.ne.s32.totalorder %s39_s22, %s203_s27  ;;  %p209_p12 = scmp.lt.s32.totalorder %s203_s27, %s203_s27 }
  0x1d   :  { %p210_p13 = por %p209_p12, %p208_p11 }
  0x1f   :  { %p211_p0 = pnand %p210_p13, %p204_p10 }
  0x21   :  { %214 = shalt.err (!%p211_p0)
}
  0x22   :  { %44 = dma.hbm_to_vmem [thread:$0]  %s282_s2, 256, %s39_s22, [#allocation6], %s242_s15, %s242_s15, %s243_s16  }
  0x23   :  { %235 = dma.done.wait [#allocation3], 16  }
  0x24   :  { %236 = vsyncadd [#allocation3], 4294967280 }
  0x25   :  { %237 = dma.done.wait [#allocation6], 512  }
  0x26   :  { %238 = vsyncadd [#allocation6], 4294966784  ;;  %v87_v0 = vlaneseq  ;;  %v56_v1 = vld [vmem:[#allocation7] sm:$0xff]  ;;  %v54_v2 = vld [vmem:[#allocation5] sm:$0xff]  ;;  %v246_v14 = vmov 0.0   ;;  %s247_s0 = smov [#allocation8]  }
  0x27   :  { %v57_v3 = vld [vmem:[#allocation7 + $0x8] sm:$0xff]  ;;  %v70_v4 = vmul.f32 %v56_v1, %v56_v1  ;;  %v64_v5 = vmul.f32 %v54_v2, %v54_v2  ;;  %v55_v6 = vld [vmem:[#allocation5 + $0x8] sm:$0xff]  ;;  %v58_v13 = vmul.f32 %v56_v1, %v54_v2  ;;  %s131_s2 = sshll.u32 %s247_s0, 4  ;;  %vm123_vm2 = vcmask 0   ;;  %s132_s2 = int_to_ptr.vmem [resolvable:$true] %s131_s2 }
  0x28   :  { %v88_v7 = vshrl.u32 %v87_v0, 7  ;;  %v71_v8 = vmul.f32 %v57_v3, %v57_v3  ;;  %v65_v9 = vmul.f32 %v55_v6, %v55_v6  ;;  %v141_v11 = vld [vmem:[#allocation2] ss:$0 sm:$0xff]  ;;  %v59_v12 = vmul.f32 %v57_v3, %v55_v6  ;;  %s215_s29 = scalar_lea.vmem %s132_s2, 16  ;;  %s219_s30 = scalar_lea.vmem %s132_s2, 32 }
  0x29   :  { %72 = vadd.xlane.f32.xlu1 %v70_v4  ;;  %66 = vadd.xlane.f32.xlu0 %v64_v5  ;;  %p216_p1 = scmp.ne.s32.totalorder %s132_s2, %s215_s29  ;;  %p220_p2 = scmp.lt.s32.totalorder %s132_s2, %s132_s2 }
  0x2a   :  { %v89_v10 = vadd.s32 8, %v88_v7  ;;  %vm94_vm1 = vcmp.eq.s32.totalorder %v88_v7, %v141_v11  ;;  %p221_p3 = scmp.lt.s32.totalorder %s219_s30, %s215_s29 }
  0x2b   :  { %v142_v16 = vsel %vm94_vm1, 1.0, %v246_v14 }
  0x2c   :  { %vm95_vm0 = vcmp.eq.s32.totalorder %v89_v10, %v141_v11  ;;  %p222_p4 = por %p221_p3, %p220_p2 }
  0x2d   :  { %74 = vadd.xlane.f32.xlu1 %v71_v8  ;;  %68 = vadd.xlane.f32.xlu0 %v65_v9  ;;  %v143_v15 = vsel %vm95_vm0, 1.0, %v246_v14 }
  0x2e   :  { %p223_p5 = pnand %p222_p4, %p216_p1 }
  0x31   :  { %62 = vadd.xlane.f32.xlu1 %v59_v12  ;;  %60 = vadd.xlane.f32.xlu0 %v58_v13 }
  0x35   :  { %102 = vadd.xlane.f32.xlu1 %v143_v15  ;;  %100 = vadd.xlane.f32.xlu0 %v142_v16 }
  0xb2   :  { %v73_v17 = vpop.xlane.xlu1 %72  ;;  %v67_v18 = vpop.xlane.xlu0 %66 }
  0xb3   :  { %v76_v19 = vmul.f32 %v73_v17, %v67_v18 }
  0xb5   :  { %v78_v20 = vmax.f32 %v76_v19, 1e-16 }
  0xb6   :  { %v75_v21 = vpop.xlane.xlu1 %74  ;;  %v69_v22 = vpop.xlane.xlu0 %68 }
  0xb7   :  { %151 = vrsqrt.f32 %v78_v20  ;;  %v77_v23 = vmul.f32 %v75_v21, %v69_v22 }
  0xb9   :  { %v79_v24 = vmax.f32 %v77_v23, 1e-16 }
  0xba   :  { %v63_v25 = vpop.xlane.xlu1 %62  ;;  %v61_v26 = vpop.xlane.xlu0 %60 }
  0xbb   :  { %153 = vrsqrt.f32 %v79_v24 }
  0xbe   :  { %v103_v27 = vpop.xlane.xlu1 %102  ;;  %v101_v28 = vpop.xlane.xlu0 %100 }
  0xbf   :  { %v104_v29 = vmax.f32 %v101_v28, %v103_v27 }
  0xc1   :  { %v105_v32 = vrot.slane %v104_v29, 4 }
  0xc3   :  { %v106_v36 = vmax.f32 %v104_v29, %v105_v32 }
  0xc4   :  { %v152_v30 = vpop.eup %151 }
  0xc5   :  { %v82_v31 = vmul.f32 %v152_v30, %v61_v26  ;;  %v107_v40 = vrot.slane %v106_v36, 2 }
  0xc7   :  { %v84_v35 = vsub.f32 1.0, %v82_v31  ;;  %v108_v43 = vmax.f32 %v106_v36, %v107_v40 }
  0xc8   :  { %v154_v33 = vpop.eup %153 }
  0xc9   :  { %v83_v34 = vmul.f32 %v154_v33, %v63_v25  ;;  %v111_v39 = vmul.f32 %v101_v28, %v84_v35  ;;  %v109_v46 = vrot.slane %v108_v43, 1 }
  0xcb   :  { %v85_v37 = vsub.f32 1.0, %v83_v34  ;;  %v110_v49 = vmax.f32 %v108_v43, %v109_v46 }
  0xcd   :  { %v112_v38 = vmul.f32 %v103_v27, %v85_v37  ;;  %vm120_vm3 = vcmp.lt.f32.partialorder %v110_v49, 8.0 }
  0xcf   :  { %v113_v41 = vadd.f32 %v112_v38, %v111_v39 }
  0xd1   :  { %v114_v42 = vrot.slane %v113_v41, 4 }
  0xd3   :  { %v115_v44 = vadd.f32 %v114_v42, %v113_v41 }
  0xd5   :  { %v116_v45 = vrot.slane %v115_v44, 2 }
  0xd7   :  { %v117_v47 = vadd.f32 %v116_v45, %v115_v44 }
  0xd9   :  { %v118_v48 = vrot.slane %v117_v47, 1 }
  0xdb   :  { %v119_v50 = vadd.f32 %v118_v48, %v117_v47 }
  0xdd   :  { %v121_v51 = vmul.f32 0.125, %v119_v50 }
  0xdf   :  { %v122_v52 = vsel %vm120_vm3, %v121_v51, 0.0 }
  0xe0   :  { %124 = vst.msk [vmem:[#allocation8] sm:$0x1] %vm123_vm2, %v122_v52 }
  0xe1   :  { %226 = shalt.err (!%p223_p5)
}
  0xe2   :  { %134 = dma.vmem_to_hbm [thread:$0]  %s132_s2, 16, %s283_s3, [#allocation4]  }
  0xe3   :  { %239 = dma.done.wait [#allocation4], 16  }
  0xe4   :  { %240 = vsyncadd [#allocation4], 4294967280 }
  0xe5   :  { %138 = vsyncpa [#allocation3], 1 }
  0xe6   :  { %139 = vsyncpa [#allocation6], 1 }
  0xe7   :  { %140 = vsyncpa [#allocation4], 1 }

</bundles_post_ra>
